<compile_context>
chip_gen: v7x
topology: tpu7x:2x2x1
jax: 0.10.0
libtpu: 0.0.40
codegen_flags: <defaults>
</compile_context>

<pallas_src>
import functools

import jax
import jax.numpy as jnp
from jax import lax
from jax.experimental import pallas as pl
from jax.experimental.pallas import tpu as pltpu


def _round_up(x, m):
    return ((x + m - 1) // m) * m


# contract last dims: (B, R) x (N, R) -> (B, N)   (MXU-native NT matmul)
_NT_DIMS = (((1,), (1,)), ((), ()))


def _init_state(m_sc, l_sc, acc_sc):
    m_sc[...] = jnp.full(m_sc.shape, -jnp.inf, jnp.float32)
    l_sc[...] = jnp.zeros(l_sc.shape, jnp.float32)
    acc_sc[...] = jnp.zeros(acc_sc.shape, jnp.float32)


def _mask_padded_cols(s, n_valid):
    """Neutralize padded dataset columns. Static no-op unless padding exists."""
    tn = s.shape[1]
    if n_valid % tn != 0:                      # padding only in the last tile
        col = pl.program_id(1) * tn + lax.broadcasted_iota(jnp.int32, s.shape, 1)
        s = jnp.where(col < n_valid, s, jnp.float32(-1e30))
    return s


def _online_softmax_update(s, d_ref, m_sc, l_sc, acc_sc):
    """Flash-style online softmax + weighted-sample-sum accumulation."""
    m_prev = m_sc[...]
    m_new = jnp.maximum(m_prev, jnp.max(s, axis=1, keepdims=True))
    alpha = jnp.exp(m_prev - m_new)
    p = jnp.exp(s - m_new)                                        # (TB, TN) f32
    l_sc[...] = alpha * l_sc[...] + jnp.sum(p, axis=1, keepdims=True)
    # Second matmul reuses the SAME streamed sample tile; p cast to the MXU
    # dtype, accumulation in f32.
    acc_sc[...] = alpha * acc_sc[...] + jnp.dot(
        p.astype(d_ref.dtype), d_ref[...], preferred_element_type=jnp.float32)
    m_sc[...] = m_new


def _finalize(x, acc_sc, l_sc, inv_s_ref, out_ref):
    # Exact reciprocal on a (TB, 1) tile: negligible cost; approx=True would
    # add ~2^-12 relative error to the normalization (enable if tolerated).
    x0 = acc_sc[...] * pl.reciprocal(l_sc[...])
    out_ref[...] = ((x.astype(jnp.float32) - x0) * inv_s_ref[...]).astype(out_ref.dtype)


def _ideal_diffuser_kernel(x_ref, d_ref, hn_ref, scale2_ref, inv_s_ref,
                           out_ref, m_sc, l_sc, acc_sc, *, n_valid):
    j = pl.program_id(1)

    @pl.when(j == 0)
    def _():
        _init_state(m_sc, l_sc, acc_sc)

    x = x_ref[...]
    # log weight (up to a per-row constant that cancels in the softmax):
    #   -||x - d||^2 / (2 sigma^2)  ==  (x.d - 0.5||d||^2) / sigma^2 + const(row)
    dot = lax.dot_general(x, d_ref[...], _NT_DIMS,
                          preferred_element_type=jnp.float32)     # (TB, TN)
    s = (dot - hn_ref[...]) * scale2_ref[...]
    s = _mask_padded_cols(s, n_valid)

    _online_softmax_update(s, d_ref, m_sc, l_sc, acc_sc)

    @pl.when(j == pl.num_programs(1) - 1)
    def _():
        _finalize(x, acc_sc, l_sc, inv_s_ref, out_ref)


def _ideal_diffuser_cond_kernel(x_ref, d_ref, hn_ref, scale2_ref, inv_s_ref,
                                c_ref, dc_ref, hdcn_ref,
                                out_ref, m_sc, l_sc, acc_sc,
                                *, cond_scale2, n_valid):
    j = pl.program_id(1)

    @pl.when(j == 0)
    def _():
        _init_state(m_sc, l_sc, acc_sc)

    x = x_ref[...]
    dot = lax.dot_general(x, d_ref[...], _NT_DIMS,
                          preferred_element_type=jnp.float32)
    s = (dot - hn_ref[...]) * scale2_ref[...]

    cdot = lax.dot_general(c_ref[...], dc_ref[...], _NT_DIMS,
                           preferred_element_type=jnp.float32)
    s = s + (cdot - hdcn_ref[...]) * cond_scale2                  # 1 / cond_sigma^2
    s = _mask_padded_cols(s, n_valid)

    _online_softmax_update(s, d_ref, m_sc, l_sc, acc_sc)

    @pl.when(j == pl.num_programs(1) - 1)
    def _():
        _finalize(x, acc_sc, l_sc, inv_s_ref, out_ref)


def ideal_diffuser_forward(x, sigma, samples, cond=None, cond_samples=None,
                           cond_sigma=0.1, *,
                           mxu_dtype=jnp.bfloat16,
                           block_b=None, block_n=512,
                           min_batch_tiles=1,
                           vmem_budget_bytes=40 * 1024 * 1024):
    """Pallas implementation of IdealDiffuser.forward.

    mxu_dtype:       dtype of the MXU operands (bf16 default; f32 for exact
                     parity with the reference).  Softmax math stays f32.
    block_b/block_n: optional caps / targets for the batch / dataset tiles;
                     actual tiles are also limited by `vmem_budget_bytes`.
    min_batch_tiles: set to 2 to keep both v7x TensorCores busy when the batch
                     is large enough (trades extra sample re-streaming).
    """
    xb = x.shape[0]
    db = samples.shape[0]
    x_flat = jnp.asarray(x, jnp.float32).reshape(xb, -1)
    d_flat = jnp.asarray(samples, jnp.float32).reshape(db, -1)
    r = x_flat.shape[1]
    assert r == d_flat.shape[1], "Input x must have same dimension as data!"

    # ---- per-batch sigma -> multiplicative factors (no in-kernel divides) ---
    sigma_b = jnp.broadcast_to(jnp.squeeze(jnp.asarray(sigma, jnp.float32)), (xb,))
    scale2 = (1.0 / (sigma_b * sigma_b)).reshape(xb, 1)      # 1 / sigma^2 (2 folded)
    inv_sigma = (1.0 / sigma_b).reshape(xb, 1)

    has_cond = cond is not None
    if has_cond:
        assert cond_samples is not None, "cond buffer (cond_samples) is required"
        c_flat = jnp.asarray(cond, jnp.float32).reshape(xb, -1)
        dc_flat = jnp.asarray(cond_samples, jnp.float32).reshape(db, -1)
        rc = c_flat.shape[1]
        assert rc == dc_flat.shape[1], "cond must match cond-sample dimension!"
        rc_pad = _round_up(rc, 128)
    else:
        rc_pad = 0

    # ---- parametric tile / VMEM planning ------------------------------------
    r_pad = _round_up(r, 128)
    itemsize = jnp.dtype(mxu_dtype).itemsize

    # Per batch row resident in VMEM: x (double-buffered, mxu dtype), out
    # (double-buffered f32), f32 acc scratch, cond input (double-buffered).
    per_row = r_pad * (2 * itemsize + 2 * 4 + 4) + rc_pad * 2 * itemsize + 64
    # Per dataset column streamed per step: double-buffered sample (+ cond
    # sample) tile plus the tiny half-norm rows.
    per_col = (r_pad + rc_pad) * 2 * itemsize + 16

    # Dataset tile: as large as requested, capped so the streamed tiles use at
    # most ~half of the budget; always lane-dense (multiple of 128).
    tn_cap = max(128, ((vmem_budget_bytes // 2) // per_col) // 128 * 128)
    if db <= block_n:
        tn = min(_round_up(db, 128), tn_cap)
    else:
        tn = min(_round_up(block_n, 128), tn_cap)
    n_pad = _round_up(db, tn)

    # Batch tile: as large as fits the remaining budget (ideally the whole
    # padded batch -> the sample set streams from HBM exactly once).
    b8 = _round_up(xb, 8)
    rem = vmem_budget_bytes - tn * per_col
    tb_cap = max(8, (rem // per_row) // 8 * 8)
    tb = min(b8, tb_cap)
    if block_b is not None:
        tb = min(tb, max(8, _round_up(block_b, 8)))
    if min_batch_tiles > 1:
        tb = min(tb, max(8, _round_up(-(-b8 // min_batch_tiles), 8)))
    tb = max(tb, 8)
    b_pad = _round_up(xb, tb)

    vmem_est = tb * per_row + tn * per_col + (1 << 20)
    vmem_limit = int(min(60 << 20, max(32 << 20, vmem_est + (8 << 20))))

    # ---- padded operands (norms hoisted & halved, MXU dtype cast once) ------
    x_p = jnp.zeros((b_pad, r_pad), mxu_dtype).at[:xb, :r].set(x_flat.astype(mxu_dtype))
    d_p = jnp.zeros((n_pad, r_pad), mxu_dtype).at[:db, :r].set(d_flat.astype(mxu_dtype))
    hn_p = jnp.zeros((1, n_pad), jnp.float32).at[0, :db].set(
        0.5 * jnp.sum(d_flat * d_flat, axis=1))
    scale2_p = jnp.ones((b_pad, 1), jnp.float32).at[:xb].set(scale2)
    inv_s_p = jnp.ones((b_pad, 1), jnp.float32).at[:xb].set(inv_sigma)

    args = [x_p, d_p, hn_p, scale2_p, inv_s_p]
    in_specs = [
        pl.BlockSpec((tb, r_pad), lambda i, j: (i, 0)),   # x: resident across N
        pl.BlockSpec((tn, r_pad), lambda i, j: (j, 0)),   # samples: single stream
        pl.BlockSpec((1, tn), lambda i, j: (0, j)),       # 0.5*||d||^2
        pl.BlockSpec((tb, 1), lambda i, j: (i, 0)),       # 1/sigma^2
        pl.BlockSpec((tb, 1), lambda i, j: (i, 0)),       # 1/sigma
    ]

    if has_cond:
        c_p = jnp.zeros((b_pad, rc_pad), mxu_dtype).at[:xb, :rc].set(
            c_flat.astype(mxu_dtype))
        dc_p = jnp.zeros((n_pad, rc_pad), mxu_dtype).at[:db, :rc].set(
            dc_flat.astype(mxu_dtype))
        hdcn_p = jnp.zeros((1, n_pad), jnp.float32).at[0, :db].set(
            0.5 * jnp.sum(dc_flat * dc_flat, axis=1))
        args += [c_p, dc_p, hdcn_p]
        in_specs += [
            pl.BlockSpec((tb, rc_pad), lambda i, j: (i, 0)),  # cond: resident
            pl.BlockSpec((tn, rc_pad), lambda i, j: (j, 0)),  # cond samples
            pl.BlockSpec((1, tn), lambda i, j: (0, j)),       # 0.5*||dc||^2
        ]
        kernel = functools.partial(_ideal_diffuser_cond_kernel,
                                   cond_scale2=1.0 / float(cond_sigma) ** 2,
                                   n_valid=db)
    else:
        kernel = functools.partial(_ideal_diffuser_kernel, n_valid=db)

    out_p = pl.pallas_call(
        kernel,
        grid_spec=pltpu.PrefetchScalarGridSpec(
            num_scalar_prefetch=0,
            grid=(b_pad // tb, n_pad // tn),
            in_specs=in_specs,
            out_specs=pl.BlockSpec((tb, r_pad), lambda i, j: (i, 0)),
            scratch_shapes=[pltpu.VMEM((tb, 1), jnp.float32),       # running max m
                            pltpu.VMEM((tb, 1), jnp.float32),       # running sum l
                            pltpu.VMEM((tb, r_pad), jnp.float32)]), # weighted acc
        out_shape=jax.ShapeDtypeStruct((b_pad, r_pad), jnp.float32),
        compiler_params=pltpu.CompilerParams(
            dimension_semantics=("parallel", "arbitrary"),
            vmem_limit_bytes=vmem_limit),
    )(*args)

    return out_p[:xb, :r].reshape(x.shape)


def _reference(x, sigma, samples, cond=None, cond_samples=None, cond_sigma=0.1):
    """Pure-JAX transcription of the torch forward, for verification."""
    xb = x.shape[0]
    db = samples.shape[0]
    xf = x.reshape(xb, -1)
    df = samples.reshape(db, -1)
    sq = (jnp.sum(xf ** 2, 1)[None, :] + jnp.sum(df ** 2, 1)[:, None]
          - 2.0 * df @ xf.T)                                    # (db, xb)
    s = jnp.broadcast_to(jnp.squeeze(jnp.asarray(sigma, jnp.float32)), (xb,))
    lw = -sq / (2.0 * s[None, :] ** 2)
    if cond is not None:
        cf = cond.reshape(xb, -1)
        dcf = cond_samples.reshape(db, -1)
        csq = (jnp.sum(cf ** 2, 1)[None, :] + jnp.sum(dcf ** 2, 1)[:, None]
               - 2.0 * dcf @ cf.T)
        lw = lw - csq / (2.0 * cond_sigma ** 2)
    w = jax.nn.softmax(lw, axis=0)                              # (db, xb)
    x0 = jnp.einsum('ij,i...->j...', w, samples)
    s_r = s.reshape((xb,) + (1,) * (x.ndim - 1))
    return (x - x0) / s_r


if __name__ == "__main__":
    key = jax.random.PRNGKey(0)
    k1, k2, k3, k4, k5 = jax.random.split(key, 5)

    # Small demo shapes (NCHW) consistent with the module.
    B, N, C, H, W = 2, 8, 4, 16, 16
    Rc = 8

    samples = jax.random.normal(k1, (N, C, H, W), jnp.float32)    # buffer
    cond_samples = jax.random.normal(k4, (N, Rc), jnp.float32)    # buffer
    x = jax.random.normal(k2, (B, C, H, W), jnp.float32)
    sigma = jax.random.uniform(k3, (B,), jnp.float32, 0.5, 1.5)
    cond = jax.random.normal(k5, (B, Rc), jnp.float32)

    # ---- exact-parity checks: f32 MXU path ----------------------------------
    out = jax.block_until_ready(
        ideal_diffuser_forward(x, sigma, samples, mxu_dtype=jnp.float32))
    ref = _reference(x, sigma, samples)
    assert out.shape == x.shape and out.dtype == jnp.float32
    assert jnp.allclose(out, ref, atol=1e-3, rtol=1e-3), "mismatch (f32, no cond)"

    out_c = jax.block_until_ready(
        ideal_diffuser_forward(x, sigma, samples, cond, cond_samples, 0.1,
                               mxu_dtype=jnp.float32))
    ref_c = _reference(x, sigma, samples, cond, cond_samples, 0.1)
    assert jnp.allclose(out_c, ref_c, atol=1e-3, rtol=1e-3), "mismatch (f32, cond)"

    # Larger case exercising the streaming multi-tile online-softmax path
    # (2 batch tiles x 3 dataset tiles, batch + dataset padding).
    kb1, kb2, kb3, kb4, kb5 = jax.random.split(jax.random.PRNGKey(1), 5)
    B2, N2 = 10, 384
    samples2 = jax.random.normal(kb1, (N2, C, H, W), jnp.float32)
    cond_samples2 = jax.random.normal(kb4, (N2, Rc), jnp.float32)
    x2 = jax.random.normal(kb2, (B2, C, H, W), jnp.float32)
    sigma2 = jax.random.uniform(kb3, (B2,), jnp.float32, 0.5, 1.5)
    cond2 = jax.random.normal(kb5, (B2, Rc), jnp.float32)

    out2 = jax.block_until_ready(
        ideal_diffuser_forward(x2, sigma2, samples2, cond2, cond_samples2, 0.1,
                               mxu_dtype=jnp.float32, block_b=8, block_n=128))
    ref2 = _reference(x2, sigma2, samples2, cond2, cond_samples2, 0.1)
    assert jnp.allclose(out2, ref2, atol=1e-3, rtol=1e-3), "mismatch (f32, tiled)"

    # ---- performance path: bf16 MXU inputs, f32 accumulation (the default) --
    # bf16 rounding perturbs the log-weights; rows whose top-2 softmax weights
    # are nearly tied can legitimately shift, so use finiteness + a robust
    # (median per-row mean-abs) error statistic rather than a tight elementwise
    # match for this path.
    out_bf_small = jax.block_until_ready(ideal_diffuser_forward(x, sigma, samples))
    assert bool(jnp.all(jnp.isfinite(out_bf_small))), "bf16 path produced non-finite"

    out_bf = jax.block_until_ready(
        ideal_diffuser_forward(x2, sigma2, samples2, cond2, cond_samples2, 0.1,
                               block_b=8, block_n=128))
    assert bool(jnp.all(jnp.isfinite(out_bf))), "bf16 path produced non-finite"
    row_err = jnp.mean(jnp.abs(out_bf - ref2).reshape(B2, -1), axis=1)
    assert float(jnp.median(row_err)) < 5e-2, "bf16 path error too large"

    print("KERNEL_OK")
</pallas_src>

<mosaic_0001>
module attributes {stable_mosaic.version = 11 : i64} {
  func.func @_ideal_diffuser_kernel(%arg0: i32, %arg1: i32, %arg2: memref<8x1024xf32, #tpu.memory_space<vmem>>, %arg3: memref<128x1024xf32, #tpu.memory_space<vmem>>, %arg4: memref<1x128xf32, #tpu.memory_space<vmem>>, %arg5: memref<8x1xf32, #tpu.memory_space<vmem>>, %arg6: memref<8x1xf32, #tpu.memory_space<vmem>>, %arg7: memref<8x1024xf32, #tpu.memory_space<vmem>>, %arg8: memref<8x1xf32, #tpu.memory_space<vmem>>, %arg9: memref<8x1xf32, #tpu.memory_space<vmem>>, %arg10: memref<8x1024xf32, #tpu.memory_space<vmem>>) attributes {dimension_semantics = [#tpu.dimension_semantics<parallel>, #tpu.dimension_semantics<arbitrary>], iteration_bounds = array<i64: 1, 1>, scalar_prefetch = 0 : i64, scratch_operands = 3 : i64, tpu.core_type = #tpu.core_type<tc>, window_params = [{transform_indices = @transform_0, window_bounds = array<i64: 8, 1024>}, {transform_indices = @transform_1, window_bounds = array<i64: 128, 1024>}, {transform_indices = @transform_2, window_bounds = array<i64: 1, 128>}, {transform_indices = @transform_3, window_bounds = array<i64: 8, 1>}, {transform_indices = @transform_4, window_bounds = array<i64: 8, 1>}, {transform_indices = @transform_5, window_bounds = array<i64: 8, 1024>}]} {
    %c0_i32 = arith.constant 0 : i32
    %0 = arith.cmpi eq, %arg1, %c0_i32 : i32
    %1 = arith.extui %0 : i1 to i32
    %c0_i32_0 = arith.constant 0 : i32
    %2 = arith.cmpi ne, %1, %c0_i32_0 : i32
    scf.if %2 {
      %cst_28 = arith.constant 0xFF800000 : f32
      %46 = vector.broadcast %cst_28 : f32 to vector<8x1xf32>
      %c0_29 = arith.constant 0 : index
      %c0_30 = arith.constant 0 : index
      %47 = vector.load %arg8[%c0_29, %c0_30] : memref<8x1xf32, #tpu.memory_space<vmem>>, vector<8x1xf32>
      tpu.vector_store %arg8[%c0_29, %c0_30], %46 {strides = array<i32>} : memref<8x1xf32, #tpu.memory_space<vmem>>, vector<8x1xf32>,
      %cst_31 = arith.constant 0.000000e+00 : f32
      %48 = vector.broadcast %cst_31 : f32 to vector<8x1xf32>
      %c0_32 = arith.constant 0 : index
      %c0_33 = arith.constant 0 : index
      %49 = vector.load %arg9[%c0_32, %c0_33] : memref<8x1xf32, #tpu.memory_space<vmem>>, vector<8x1xf32>
      tpu.vector_store %arg9[%c0_32, %c0_33], %48 {strides = array<i32>} : memref<8x1xf32, #tpu.memory_space<vmem>>, vector<8x1xf32>,
      %cst_34 = arith.constant 0.000000e+00 : f32
      %50 = vector.broadcast %cst_34 : f32 to vector<8x1024xf32>
      %c0_35 = arith.constant 0 : index
      %c0_36 = arith.constant 0 : index
      %51 = vector.load %arg10[%c0_35, %c0_36] : memref<8x1024xf32, #tpu.memory_space<vmem>>, vector<8x1024xf32>
      tpu.vector_store %arg10[%c0_35, %c0_36], %50 {strides = array<i32>} : memref<8x1024xf32, #tpu.memory_space<vmem>>, vector<8x1024xf32>,
    } else {
    }
    %c0 = arith.constant 0 : index
    %c0_1 = arith.constant 0 : index
    %3 = vector.load %arg2[%c0, %c0_1] : memref<8x1024xf32, #tpu.memory_space<vmem>>, vector<8x1024xf32>
    %c0_2 = arith.constant 0 : index
    %c0_3 = arith.constant 0 : index
    %4 = vector.load %arg3[%c0_2, %c0_3] : memref<128x1024xf32, #tpu.memory_space<vmem>>, vector<128x1024xf32>
    %cst = arith.constant dense<0.000000e+00> : vector<8x128xf32>
    %5 = tpu.matmul %3, %4, %cst {dimension_numbers = #tpu.dot_dimension_numbers<[1], [1], [0], [0], [0, 0, 1, 0], [], []>} : vector<8x1024xf32>, vector<128x1024xf32>, vector<8x128xf32> -> vector<8x128xf32>
    %c0_4 = arith.constant 0 : index
    %c0_5 = arith.constant 0 : index
    %6 = vector.load %arg4[%c0_4, %c0_5] : memref<1x128xf32, #tpu.memory_space<vmem>>, vector<1x128xf32>
    %7 = vector.broadcast %6 : vector<1x128xf32> to vector<8x128xf32>
    %8 = arith.subf %5, %7 : vector<8x128xf32>
    %c0_6 = arith.constant 0 : index
    %c0_7 = arith.constant 0 : index
    %9 = vector.load %arg5[%c0_6, %c0_7] : memref<8x1xf32, #tpu.memory_space<vmem>>, vector<8x1xf32>
    %10 = vector.broadcast %9 : vector<8x1xf32> to vector<8x128xf32>
    %11 = arith.mulf %8, %10 : vector<8x128xf32>
    %c128_i32 = arith.constant 128 : i32
    %12 = arith.muli %arg1, %c128_i32 : i32
    %13 = tpu.iota {dimensions = array<i32: 1>} : vector<8x128xi32>
    %14 = vector.broadcast %12 : i32 to vector<8x128xi32>
    %15 = arith.addi %14, %13 : vector<8x128xi32>
    %c8_i32 = arith.constant 8 : i32
    %16 = vector.broadcast %c8_i32 : i32 to vector<8x128xi32>
    %17 = arith.cmpi slt, %15, %16 : vector<8x128xi32>
    %cst_8 = arith.constant -1.000000e+30 : f32
    %18 = vector.broadcast %cst_8 : f32 to vector<8x128xf32>
    %19 = arith.select %17, %11, %18 : vector<8x128xi1>, vector<8x128xf32>
    %c0_9 = arith.constant 0 : index
    %c0_10 = arith.constant 0 : index
    %20 = vector.load %arg8[%c0_9, %c0_10] : memref<8x1xf32, #tpu.memory_space<vmem>>, vector<8x1xf32>
    %cst_11 = arith.constant dense<0xFF800000> : vector<8xf32>
    %21 = vector.multi_reduction <maximumf>, %19, %cst_11 [1] : vector<8x128xf32> to vector<8xf32>
    %22 = vector.shape_cast %21 : vector<8xf32> to vector<8x1xf32>
    %23 = arith.maximumf %20, %22 : vector<8x1xf32>
    %24 = arith.subf %20, %23 : vector<8x1xf32>
    %25 = math.exp %24 : vector<8x1xf32>
    %26 = vector.broadcast %23 : vector<8x1xf32> to vector<8x128xf32>
    %27 = arith.subf %19, %26 : vector<8x128xf32>
    %28 = math.exp %27 : vector<8x128xf32>
    %c0_12 = arith.constant 0 : index
    %c0_13 = arith.constant 0 : index
    %29 = vector.load %arg9[%c0_12, %c0_13] : memref<8x1xf32, #tpu.memory_space<vmem>>, vector<8x1xf32>
    %30 = arith.mulf %25, %29 : vector<8x1xf32>
    %cst_14 = arith.constant dense<0.000000e+00> : vector<8xf32>
    %31 = vector.multi_reduction <add>, %28, %cst_14 [1] : vector<8x128xf32> to vector<8xf32>
    %32 = vector.shape_cast %31 : vector<8xf32> to vector<8x1xf32>
    %33 = arith.addf %30, %32 : vector<8x1xf32>
    %c0_15 = arith.constant 0 : index
    %c0_16 = arith.constant 0 : index
    %34 = vector.load %arg9[%c0_15, %c0_16] : memref<8x1xf32, #tpu.memory_space<vmem>>, vector<8x1xf32>
    tpu.vector_store %arg9[%c0_15, %c0_16], %33 {strides = array<i32>} : memref<8x1xf32, #tpu.memory_space<vmem>>, vector<8x1xf32>,
    %c0_17 = arith.constant 0 : index
    %c0_18 = arith.constant 0 : index
    %35 = vector.load %arg10[%c0_17, %c0_18] : memref<8x1024xf32, #tpu.memory_space<vmem>>, vector<8x1024xf32>
    %36 = vector.broadcast %25 : vector<8x1xf32> to vector<8x1024xf32>
    %37 = arith.mulf %36, %35 : vector<8x1024xf32>
    %c0_19 = arith.constant 0 : index
    %c0_20 = arith.constant 0 : index
    %38 = vector.load %arg3[%c0_19, %c0_20] : memref<128x1024xf32, #tpu.memory_space<vmem>>, vector<128x1024xf32>
    %cst_21 = arith.constant dense<0.000000e+00> : vector<8x1024xf32>
    %39 = tpu.matmul %28, %38, %cst_21 {dimension_numbers = #tpu.dot_dimension_numbers<[1], [0], [0], [1], [0, 0, 1, 1], [], []>} : vector<8x128xf32>, vector<128x1024xf32>, vector<8x1024xf32> -> vector<8x1024xf32>
    %40 = arith.addf %37, %39 : vector<8x1024xf32>
    %c0_22 = arith.constant 0 : index
    %c0_23 = arith.constant 0 : index
    %41 = vector.load %arg10[%c0_22, %c0_23] : memref<8x1024xf32, #tpu.memory_space<vmem>>, vector<8x1024xf32>
    tpu.vector_store %arg10[%c0_22, %c0_23], %40 {strides = array<i32>} : memref<8x1024xf32, #tpu.memory_space<vmem>>, vector<8x1024xf32>,
    %c0_24 = arith.constant 0 : index
    %c0_25 = arith.constant 0 : index
    %42 = vector.load %arg8[%c0_24, %c0_25] : memref<8x1xf32, #tpu.memory_space<vmem>>, vector<8x1xf32>
    tpu.vector_store %arg8[%c0_24, %c0_25], %23 {strides = array<i32>} : memref<8x1xf32, #tpu.memory_space<vmem>>, vector<8x1xf32>,
    %c0_i32_26 = arith.constant 0 : i32
    %43 = arith.cmpi eq, %arg1, %c0_i32_26 : i32
    %44 = arith.extui %43 : i1 to i32
    %c0_i32_27 = arith.constant 0 : i32
    %45 = arith.cmpi ne, %44, %c0_i32_27 : i32
    scf.if %45 {
      %c0_28 = arith.constant 0 : index
      %c0_29 = arith.constant 0 : index
      %46 = vector.load %arg10[%c0_28, %c0_29] : memref<8x1024xf32, #tpu.memory_space<vmem>>, vector<8x1024xf32>
      %c0_30 = arith.constant 0 : index
      %c0_31 = arith.constant 0 : index
      %47 = vector.load %arg9[%c0_30, %c0_31] : memref<8x1xf32, #tpu.memory_space<vmem>>, vector<8x1xf32>
      %48 = tpu.reciprocal %47 : vector<8x1xf32> -> vector<8x1xf32>
      %49 = vector.broadcast %48 : vector<8x1xf32> to vector<8x1024xf32>
      %50 = arith.mulf %46, %49 : vector<8x1024xf32>
      %51 = arith.subf %3, %50 : vector<8x1024xf32>
      %c0_32 = arith.constant 0 : index
      %c0_33 = arith.constant 0 : index
      %52 = vector.load %arg6[%c0_32, %c0_33] : memref<8x1xf32, #tpu.memory_space<vmem>>, vector<8x1xf32>
      %53 = vector.broadcast %52 : vector<8x1xf32> to vector<8x1024xf32>
      %54 = arith.mulf %51, %53 : vector<8x1024xf32>
      %c0_34 = arith.constant 0 : index
      %c0_35 = arith.constant 0 : index
      %55 = vector.load %arg7[%c0_34, %c0_35] : memref<8x1024xf32, #tpu.memory_space<vmem>>, vector<8x1024xf32>
      tpu.vector_store %arg7[%c0_34, %c0_35], %54 {strides = array<i32>} : memref<8x1024xf32, #tpu.memory_space<vmem>>, vector<8x1024xf32>,
    } else {
    }
    return
  }
  func.func @transform_0(%arg0: i32, %arg1: i32) -> (i32, i32) {
    %c0_i32 = arith.constant 0 : i32
    %c0_i32_0 = arith.constant 0 : i32
    return %arg0, %c0_i32 : i32, i32
  }
  func.func @transform_1(%arg0: i32, %arg1: i32) -> (i32, i32) {
    %c0_i32 = arith.constant 0 : i32
    %c0_i32_0 = arith.constant 0 : i32
    return %arg1, %c0_i32 : i32, i32
  }
  func.func @transform_2(%arg0: i32, %arg1: i32) -> (i32, i32) {
    %c0_i32 = arith.constant 0 : i32
    %c0_i32_0 = arith.constant 0 : i32
    return %c0_i32, %arg1 : i32, i32
  }
  func.func @transform_3(%arg0: i32, %arg1: i32) -> (i32, i32) {
    %c0_i32 = arith.constant 0 : i32
    %c0_i32_0 = arith.constant 0 : i32
    return %arg0, %c0_i32 : i32, i32
  }
  func.func @transform_4(%arg0: i32, %arg1: i32) -> (i32, i32) {
    %c0_i32 = arith.constant 0 : i32
    %c0_i32_0 = arith.constant 0 : i32
    return %arg0, %c0_i32 : i32, i32
  }
  func.func @transform_5(%arg0: i32, %arg1: i32) -> (i32, i32) {
    %c0_i32 = arith.constant 0 : i32
    %c0_i32_0 = arith.constant 0 : i32
    return %arg0, %c0_i32 : i32, i32
  }
}

</mosaic_0001>

<bundles_post_ra>
// kernel: tpu_custom_call.1
= control target key start
LH: loop header
LB: loop body
LE: loop exit
PB: predicated region body
PF: predicated region fallthrough
CT: control target
= control target key end

     0   :  { %10 = vsyncpa [#allocation6], 0  ;;  %s1776_s0 = inlined_call_operand.hbm [shape: f32[8,1024], index: 0, kind: input, shape index: {}]   ;;  %s1777_s1 = inlined_call_operand.hbm [shape: f32[128,1024], index: 1, kind: input, shape index: {}]   ;;  %s1778_s2 = inlined_call_operand.vmem [shape: f32[1,128], index: 2, kind: input, shape index: {}]   ;;  %s1779_s3 = inlined_call_operand.vmem [shape: f32[8,1], index: 3, kind: input, shape index: {}]   ;;  %s1780_s4 = inlined_call_operand.vmem [shape: f32[8,1], index: 4, kind: input, shape index: {}]   ;;  %s1781_s5 = inlined_call_operand.hbm [shape: f32[8,1024], index: 5, kind: output, shape index: {}]  }
   0x1   :  { %11 = vsyncpa [#allocation9], 0 }
   0x2   :  { %12 = vsyncpa [#allocation7], 0  ;;  %s1394_s18 = smov [#allocation5]   ;;  %s1395_s20 = smov [#allocation8]  }
   0x3   :  { %s19_s19 = sshll.u32 %s1394_s18, 4  ;;  %s28_s21 = sshll.u32 %s1395_s20, 4  ;;  %s20_s19 = int_to_ptr.vmem [resolvable:$true] %s19_s19  ;;  %s1432_s21 = int_to_ptr.vmem [resolvable:$true] %s28_s21 }
   0x4   :  { %s1322_s24 = scalar_lea.hbm %s1776_s0, 1024 }
   0x5   :  { %p1323_p0 = scmp.ne.s32.totalorder %s1776_s0, %s1322_s24  ;;  %p1326_p1 = scmp.lt.u32.totalorder %s1322_s24, %s1776_s0 }
   0x7   :  { %p1328_p2 = pnand %p1326_p1, %p1323_p0 }
   0x9   :  { %1331 = shalt.err (!%p1328_p2)
}
   0xa   :  { %s1332_s29 = scalar_lea.vmem %s20_s19, 1024  ;;  %p1337_p4 = scmp.lt.s32.totalorder %s20_s19, %s20_s19 }
   0xb   :  { %p1333_p3 = scmp.ne.s32.totalorder %s20_s19, %s1332_s29  ;;  %p1338_p5 = scmp.lt.s32.totalorder %s1332_s29, %s1332_s29 }
   0xd   :  { %p1339_p6 = por %p1338_p5, %p1337_p4 }
   0xf   :  { %p1340_p7 = pnand %p1339_p6, %p1333_p3 }
  0x11   :  { %1343 = shalt.err (!%p1340_p7)
}
  0x12   :  { %22 = dma.hbm_to_vmem [thread:$0]  %s1776_s0, 1024, %s20_s19, [#allocation6]  }
  0x13   :  { %s1344_s9 = scalar_lea.hbm %s1777_s1, 16384 }
  0x14   :  { %p1345_p8 = scmp.ne.s32.totalorder %s1777_s1, %s1344_s9  ;;  %p1348_p9 = scmp.lt.u32.totalorder %s1344_s9, %s1777_s1 }
  0x16   :  { %p1350_p10 = pnand %p1348_p9, %p1345_p8 }
  0x18   :  { %1353 = shalt.err (!%p1350_p10)
}
  0x19   :  { %s1354_s14 = scalar_lea.vmem %s1432_s21, 16384  ;;  %p1359_p12 = scmp.lt.s32.totalorder %s1432_s21, %s1432_s21 }
  0x1a   :  { %p1355_p11 = scmp.ne.s32.totalorder %s1432_s21, %s1354_s14  ;;  %p1360_p13 = scmp.lt.s32.totalorder %s1354_s14, %s1354_s14 }
  0x1c   :  { %p1361_p0 = por %p1360_p13, %p1359_p12 }
  0x1e   :  { %p1362_p1 = pnand %p1361_p0, %p1355_p11 }
  0x20   :  { %1365 = shalt.err (!%p1362_p1)
}
  0x21   :  { %s1396_s0 = smov 1024   ;;  %s1397_s15 = smov 64  }
  0x22   :  { %34 = dma.hbm_to_vmem [thread:$0]  %s1777_s1, 16384, %s1432_s21, [#allocation9], %s1396_s0, %s1396_s0, %s1397_s15  }
  0x23   :  { %1388 = dma.done.wait [#allocation6], 1024  }
  0x24   :  { %1389 = vsyncadd [#allocation6], 4294966272 }
  0x25   :  { %1390 = dma.done.wait [#allocation9], 16384  }
  0x26   :  { %1391 = vsyncadd [#allocation9], 4294950912  ;;  %v73_v0 = vld [vmem:[#allocation8 + $0x18] sm:$0xff]  ;;  %v72_v2 = vld [vmem:[#allocation8 + $0x10] sm:$0xff]  ;;  %vm51_vm0 = vcmask 7168  }
  0x27   :  { %v81_v1 = vld [vmem:[#allocation8 + $0x58] sm:$0xff]  ;;  %v80_v4 = vld [vmem:[#allocation8 + $0x50] sm:$0xff]  ;;  %v71_v26 = vld [vmem:[#allocation8 + $0x8] sm:$0xff] }
  0x28   :  { %v1463_v3 = vpack.c.bf16 %v81_v1, %v73_v0  ;;  %v89_v5 = vld [vmem:[#allocation8 + $0x98] sm:$0xff]  ;;  %v1465_v7 = vpack.c.bf16 %v80_v4, %v72_v2  ;;  %v88_v9 = vld [vmem:[#allocation8 + $0x90] sm:$0xff]  ;;  %v79_v27 = vld [vmem:[#allocation8 + $0x48] sm:$0xff] }
  0x29   :  { %v97_v6 = vld [vmem:[#allocation8 + $0xd8] sm:$0xff]  ;;  %v96_v10 = vld [vmem:[#allocation8 + $0xd0] sm:$0xff]  ;;  %v70_v28 = vld [vmem:[#allocation8] sm:$0xff]  ;;  %v1487_v29 = vpack.c.bf16 %v79_v27, %v71_v26 }
  0x2a   :  { %v1467_v8 = vpack.c.bf16 %v97_v6, %v89_v5  ;;  %1078 = vmatprep.subr.bf16.mxu0 %v1463_v3  ;;  %v105_v11 = vld [vmem:[#allocation8 + $0x118] sm:$0xff]  ;;  %v1472_v13 = vpack.c.bf16 %v96_v10, %v88_v9  ;;  %v104_v16 = vld [vmem:[#allocation8 + $0x110] sm:$0xff]  ;;  %v78_v30 = vld [vmem:[#allocation8 + $0x40] sm:$0xff] }
  0x2b   :  { %1080 = vmatpush1.bf16.xpose.msra.mxu0 %v1465_v7  ;;  %v113_v12 = vld [vmem:[#allocation8 + $0x158] sm:$0xff]  ;;  %v112_v17 = vld [vmem:[#allocation8 + $0x150] sm:$0xff]  ;;  %v1491_v32 = vpack.c.bf16 %v78_v30, %v70_v28  ;;  %1046 = vmatprep.subr.bf16.mxu1 %v1487_v29  ;;  %v87_v34 = vld [vmem:[#allocation8 + $0x88] sm:$0xff] }
  0x2c   :  { %1082 = vmatprep.subr.bf16.mxu0 %v1467_v8  ;;  %v1474_v14 = vpack.c.bf16 %v113_v12, %v105_v11  ;;  %v1476_v15 = vld [vmem:[#allocation5 + $0x18] sm:$0xff]  ;;  %v1481_v20 = vpack.c.bf16 %v112_v17, %v104_v16  ;;  %v120_v22 = vld [vmem:[#allocation8 + $0x190] sm:$0xff]  ;;  %v95_v35 = vld [vmem:[#allocation8 + $0xc8] sm:$0xff] }
  0x2d   :  { %1789 = vst [vmem:[#allocation14_spill] sm:$0xff] %v1476_v15  ;;  %332 = vmatprep.mubr.f32.mxu0 %v1476_v15  ;;  %v121_v18 = vld [vmem:[#allocation8 + $0x198] sm:$0xff]  ;;  %v128_v23 = vld [vmem:[#allocation8 + $0x1d0] sm:$0xff]  ;;  %1048 = vmatpush1.bf16.xpose.msra.mxu1 %v1491_v32  ;;  %v1497_v36 = vpack.c.bf16 %v95_v35, %v87_v34  ;;  %v86_v37 = vld [vmem:[#allocation8 + $0x80] sm:$0xff]  ;;  %v1400_v15 = vmov 0.0  }
  0x2e   :  { %v129_v19 = vld [vmem:[#allocation8 + $0x1d8] sm:$0xff]  ;;  %v1489_v31 = vpack.c.bf16 %v128_v23, %v120_v22  ;;  %v94_v38 = vld [vmem:[#allocation8 + $0xc0] sm:$0xff]  ;;  %v103_v39 = vld [vmem:[#allocation8 + $0x108] sm:$0xff]  ;;  %53 = vst.msk [vmem:[#allocation3] sm:$0xff] %vm51_vm0, %v1400_v15 }
  0x2f   :  { %v1483_v21 = vpack.c.bf16 %v129_v19, %v121_v18  ;;  %v137_v24 = vld [vmem:[#allocation8 + $0x218] sm:$0xff]  ;;  %1050 = vmatprep.subr.bf16.mxu1 %v1497_v36  ;;  %v111_v40 = vld [vmem:[#allocation8 + $0x148] sm:$0xff]  ;;  %v136_v41 = vld [vmem:[#allocation8 + $0x210] sm:$0xff]  ;;  %v1502_v45 = vpack.c.bf16 %v94_v38, %v86_v37 }
  0x30   :  { %v145_v25 = vld [vmem:[#allocation8 + $0x258] sm:$0xff]  ;;  %v144_v42 = vld [vmem:[#allocation8 + $0x250] sm:$0xff]  ;;  %v1504_v46 = vpack.c.bf16 %v111_v40, %v103_v39  ;;  %v102_v49 = vld [vmem:[#allocation8 + $0x100] sm:$0xff] }
  0x31   :  { %v1493_v33 = vpack.c.bf16 %v145_v25, %v137_v24  ;;  %v153_v43 = vld [vmem:[#allocation8 + $0x298] sm:$0xff]  ;;  %v1506_v47 = vpack.c.bf16 %v144_v42, %v136_v41  ;;  %v110_v50 = vld [vmem:[#allocation8 + $0x140] sm:$0xff]  ;;  %v119_v51 = vld [vmem:[#allocation8 + $0x188] sm:$0xff] }
  0x32   :  { %v161_v44 = vld [vmem:[#allocation8 + $0x2d8] sm:$0xff]  ;;  %v127_v52 = vld [vmem:[#allocation8 + $0x1c8] sm:$0xff]  ;;  %v152_v53 = vld [vmem:[#allocation8 + $0x290] sm:$0xff]  ;;  %v1514_v57 = vpack.c.bf16 %v110_v50, %v102_v49 }
  0x33   :  { %1084 = vmatpush1.bf16.xpose.msra.mxu0 %v1472_v13  ;;  %v1508_v48 = vpack.c.bf16 %v161_v44, %v153_v43  ;;  %v160_v54 = vld [vmem:[#allocation8 + $0x2d0] sm:$0xff]  ;;  %v169_v55 = vld [vmem:[#allocation8 + $0x318] sm:$0xff]  ;;  %v1516_v58 = vpack.c.bf16 %v127_v52, %v119_v51  ;;  %v118_v61 = vld [vmem:[#allocation8 + $0x180] sm:$0xff] }
  0x34   :  { %1086 = vmatprep.subr.bf16.mxu0 %v1474_v14  ;;  %v177_v56 = vld [vmem:[#allocation8 + $0x358] sm:$0xff]  ;;  %v1518_v59 = vpack.c.bf16 %v160_v54, %v152_v53  ;;  %v126_v62 = vld [vmem:[#allocation8 + $0x1c0] sm:$0xff]  ;;  %v135_v63 = vld [vmem:[#allocation8 + $0x208] sm:$0xff] }
  0x35   :  { %1052 = vmatpush1.bf16.xpose.msra.mxu1 %v1502_v45  ;;  %v1520_v60 = vpack.c.bf16 %v177_v56, %v169_v55  ;;  %v143_v0 = vld [vmem:[#allocation8 + $0x248] sm:$0xff]  ;;  %v168_v1 = vld [vmem:[#allocation8 + $0x310] sm:$0xff]  ;;  %v185_v4 = vld [vmem:[#allocation8 + $0x398] sm:$0xff]  ;;  %v1526_v6 = vpack.c.bf16 %v126_v62, %v118_v61 }
  0x36   :  { %1054 = vmatprep.subr.bf16.mxu1 %v1504_v46  ;;  %v176_v2 = vld [vmem:[#allocation8 + $0x350] sm:$0xff]  ;;  %v193_v5 = vld [vmem:[#allocation8 + $0x3d8] sm:$0xff]  ;;  %v1528_v9 = vpack.c.bf16 %v143_v0, %v135_v63  ;;  %v134_v12 = vld [vmem:[#allocation8 + $0x200] sm:$0xff]  ;;  %v1398_v0 = vmov 0  }
  0x37   :  { %v1530_v10 = vpack.c.bf16 %v176_v2, %v168_v1  ;;  %v1532_v11 = vpack.c.bf16 %v193_v5, %v185_v4  ;;  %v142_v16 = vld [vmem:[#allocation8 + $0x240] sm:$0xff]  ;;  %v151_v17 = vld [vmem:[#allocation8 + $0x288] sm:$0xff]  ;;  %v184_v19 = vld [vmem:[#allocation8 + $0x390] sm:$0xff]  ;;  %1314 = vset.pattern.permute.xlu0 %v1398_v0  ;;  %1315 = vset.pattern.permute.xlu1 %v1398_v0 }
  0x38   :  { %v159_v18 = vld [vmem:[#allocation8 + $0x2c8] sm:$0xff]  ;;  %v192_v22 = vld [vmem:[#allocation8 + $0x3d0] sm:$0xff]  ;;  %v1538_v25 = vpack.c.bf16 %v142_v16, %v134_v12  ;;  %v150_v30 = vld [vmem:[#allocation8 + $0x280] sm:$0xff] }
  0x39   :  { %v75_v23 = vld [vmem:[#allocation8 + $0x28] sm:$0xff]  ;;  %v1540_v26 = vpack.c.bf16 %v159_v18, %v151_v17  ;;  %v1542_v27 = vpack.c.bf16 %v192_v22, %v184_v19  ;;  %v158_v34 = vld [vmem:[#allocation8 + $0x2c0] sm:$0xff]  ;;  %v1557_v49 = vld [vmem:[#allocation5 + $0x10] sm:$0xff] }
  0x3a   :  { %v83_v24 = vld [vmem:[#allocation8 + $0x68] sm:$0xff]  ;;  %v74_v39 = vld [vmem:[#allocation8 + $0x20] sm:$0xff]  ;;  %v1553_v43 = vpack.c.bf16 %v158_v34, %v150_v30  ;;  %1791 = vst [vmem:[#allocation16_spill] sm:$0xff] %v1557_v49  ;;  %v486_v55 = vld [vmem:[%s1779_s3] sm:$0xff] }
  0x3b   :  { %1088 = vmatpush1.bf16.xpose.msra.mxu0 %v1481_v20  ;;  %v1544_v28 = vpack.c.bf16 %v83_v24, %v75_v23  ;;  %v167_v35 = vld [vmem:[#allocation8 + $0x308] sm:$0xff]  ;;  %v82_v40 = vld [vmem:[#allocation8 + $0x60] sm:$0xff]  ;;  %489 = vperm.xlu0 %1314, %v486_v55  }
  0x3c   :  { %1090 = vmatprep.subr.bf16.mxu0 %v1483_v21  ;;  %v175_v37 = vld [vmem:[#allocation8 + $0x348] sm:$0xff]  ;;  %v1559_v50 = vpack.c.bf16 %v82_v40, %v74_v39  ;;  %v166_v53 = vld [vmem:[#allocation8 + $0x300] sm:$0xff] }
  0x3d   :  { %1056 = vmatpush1.bf16.xpose.msra.mxu1 %v1514_v57  ;;  %v1549_v38 = vld [vmem:[#allocation5 + $0x8] sm:$0xff]  ;;  %v1555_v44 = vpack.c.bf16 %v175_v37, %v167_v35  ;;  %v174_v54 = vld [vmem:[#allocation8 + $0x340] sm:$0xff] }
  0x3e   :  { %1058 = vmatprep.subr.bf16.mxu1 %v1516_v58  ;;  %1790 = vst [vmem:[#allocation15_spill] sm:$0xff] %v1549_v38  ;;  %262 = vmatprep.mubr.f32.mxu1 %v1549_v38  ;;  %v91_v41 = vld [vmem:[#allocation8 + $0xa8] sm:$0xff]  ;;  %v90_v62 = vld [vmem:[#allocation8 + $0xa0] sm:$0xff]  ;;  %v1574_v4 = vpack.c.bf16 %v174_v54, %v166_v53 }
  0x3f   :  { %v99_v42 = vld [vmem:[#allocation8 + $0xe8] sm:$0xff]  ;;  %v98_v63 = vld [vmem:[#allocation8 + $0xe0] sm:$0xff] }
  0x40   :  { %v1561_v51 = vpack.c.bf16 %v99_v42, %v91_v41  ;;  %v1563_v52 = vld [vmem:[#allocation5 + $0x28] sm:$0xff]  ;;  %v1578_v12 = vpack.c.bf16 %v98_v63, %v90_v62  ;;  %v182_v17 = vld [vmem:[#allocation8 + $0x380] sm:$0xff] }
  0x41   :  { %1792 = vst [vmem:[#allocation17_spill] sm:$0xff] %v1563_v52  ;;  %v183_v56 = vld [vmem:[#allocation8 + $0x388] sm:$0xff]  ;;  %v190_v18 = vld [vmem:[#allocation8 + $0x3c0] sm:$0xff] }
  0x42   :  { %v191_v61 = vld [vmem:[#allocation8 + $0x3c8] sm:$0xff]  ;;  %v106_v19 = vld [vmem:[#allocation8 + $0x120] sm:$0xff]  ;;  %v1075_v30 = vpack.c.bf16 %v190_v18, %v182_v17  ;;  %v77_v18 = vld [vmem:[#allocation8 + $0x38] sm:$0xff] }
  0x43   :  { %1092 = vmatpush1.bf16.xpose.msra.mxu0 %v1489_v31  ;;  %v107_v1 = vld [vmem:[#allocation8 + $0x128] sm:$0xff]  ;;  %v1576_v5 = vpack.c.bf16 %v191_v61, %v183_v56  ;;  %v114_v22 = vld [vmem:[#allocation8 + $0x160] sm:$0xff] }
  0x44   :  { %1094 = vmatprep.subr.bf16.mxu0 %v1493_v33  ;;  %v115_v2 = vld [vmem:[#allocation8 + $0x168] sm:$0xff]  ;;  %v1586_v34 = vpack.c.bf16 %v114_v22, %v106_v19  ;;  %v122_v37 = vld [vmem:[#allocation8 + $0x1a0] sm:$0xff]  ;;  %v85_v19 = vld [vmem:[#allocation8 + $0x78] sm:$0xff] }
  0x45   :  { %1060 = vmatpush1.bf16.xpose.msra.mxu1 %v1526_v6  ;;  %v1580_v16 = vpack.c.bf16 %v115_v2, %v107_v1  ;;  %v123_v23 = vld [vmem:[#allocation8 + $0x1a8] sm:$0xff]  ;;  %v130_v39 = vld [vmem:[#allocation8 + $0x1e0] sm:$0xff]  ;;  %v93_v22 = vld [vmem:[#allocation8 + $0xb8] sm:$0xff] }
  0x46   :  { %1062 = vmatprep.subr.bf16.mxu1 %v1528_v9  ;;  %v131_v24 = vld [vmem:[#allocation8 + $0x1e8] sm:$0xff]  ;;  %v1593_v42 = vld [vmem:[#allocation5] sm:$0xff]  ;;  %v1595_v53 = vpack.c.bf16 %v130_v39, %v122_v37 }
  0x47   :  { %v1588_v35 = vpack.c.bf16 %v131_v24, %v123_v23  ;;  %v139_v40 = vld [vmem:[#allocation8 + $0x228] sm:$0xff]  ;;  %v146_v55 = vld [vmem:[#allocation8 + $0x260] sm:$0xff]  ;;  %v101_v23 = vld [vmem:[#allocation8 + $0xf8] sm:$0xff] }
  0x48   :  { %v147_v41 = vld [vmem:[#allocation8 + $0x268] sm:$0xff]  ;;  %v1641_v24 = vld [vmem:[#allocation5 + $0x20] sm:$0xff]  ;;  %v1645_v39 = vpack.c.bf16 %v101_v23, %v93_v22  ;;  %v165_v22 = vld [vmem:[#allocation8 + $0x2f8] sm:$0xff] }
  0x49   :  { %v1597_v54 = vpack.c.bf16 %v147_v41, %v139_v40  ;;  %v155_v56 = vld [vmem:[#allocation8 + $0x2a8] sm:$0xff]  ;;  %1793 = vst [vmem:[#allocation18_spill] sm:$0xff] %v1641_v24  ;;  %v100_v40 = vld [vmem:[#allocation8 + $0xf0] sm:$0xff]  ;;  %v109_v41 = vld [vmem:[#allocation8 + $0x138] sm:$0xff] }
  0x4a   :  { %v163_v61 = vld [vmem:[#allocation8 + $0x2e8] sm:$0xff] }
  0x4b   :  { %1096 = vmatpush1.bf16.xpose.msra.mxu0 %v1506_v47  ;;  %v1608_v63 = vpack.c.bf16 %v163_v61, %v155_v56  ;;  %v171_v0 = vld [vmem:[#allocation8 + $0x328] sm:$0xff]  ;;  %v108_v61 = vld [vmem:[#allocation8 + $0x130] sm:$0xff] }
  0x4c   :  { %1098 = vmatprep.subr.bf16.mxu0 %v1508_v48  ;;  %v179_v1 = vld [vmem:[#allocation8 + $0x368] sm:$0xff] }
  0x4d   :  { %1064 = vmatpush1.bf16.xpose.msra.mxu1 %v1538_v25  ;;  %v187_v2 = vld [vmem:[#allocation8 + $0x3a8] sm:$0xff] }
  0x4e   :  { %1066 = vmatprep.subr.bf16.mxu1 %v1540_v26  ;;  %v195_v17 = vld [vmem:[#allocation8 + $0x3e8] sm:$0xff] }
  0x53   :  { %1100 = vmatpush1.bf16.xpose.msra.mxu0 %v1518_v59 }
  0x54   :  { %1102 = vmatprep.subr.bf16.mxu0 %v1520_v60 }
  0x55   :  { %1068 = vmatpush1.bf16.xpose.msra.mxu1 %v1553_v43 }
  0x56   :  { %1070 = vmatprep.subr.bf16.mxu1 %v1555_v44 }
  0x5b   :  { %1104 = vmatpush1.bf16.xpose.msra.mxu0 %v1530_v10 }
  0x5c   :  { %1106 = vmatprep.subr.bf16.mxu0 %v1532_v11 }
  0x5d   :  { %1072 = vmatpush1.bf16.xpose.msra.mxu1 %v1574_v4 }
  0x5e   :  { %1074 = vmatprep.subr.bf16.mxu1 %v1576_v5 }
  0x63   :  { %1108 = vmatpush1.bf16.xpose.msra.mxu0 %v1542_v27 }
  0x64   :  { %1110 = vmatprep.subr.bf16.mxu0 %v1544_v28 }
  0x65   :  { %1076 = vmatpush1.bf16.xpose.msra.mxu1 %v1075_v30 }
  0x66   :  { %1174 = vmatprep.subr.bf16.mxu1 %v1487_v29  ;;  %v138_v29 = vld [vmem:[#allocation8 + $0x220] sm:$0xff] }
  0x67   :  { %v1606_v62 = vpack.c.bf16 %v146_v55, %v138_v29  ;;  %v117_v29 = vld [vmem:[#allocation8 + $0x178] sm:$0xff] }
  0x68   :  { %v1655_v56 = vpack.c.bf16 %v117_v29, %v109_v41  ;;  %v164_v41 = vld [vmem:[#allocation8 + $0x2f0] sm:$0xff]  ;;  %v173_v29 = vld [vmem:[#allocation8 + $0x338] sm:$0xff] }
  0x6a   :  { %333 = vmatmul.mubr.f32.vlgmr.msra.gmra.mrb[0].mxu0 %v1557_v49 }
  0x6b   :  { %1112 = vmatpush1.bf16.xpose.msra.mxu0 %v1559_v50  ;;  %402 = vmatprep.mubr.f32.mxu0 %v1563_v52 }
  0x6c   :  { %1114 = vmatprep.subr.bf16.mxu0 %v1561_v51  ;;  %263 = vmatmul.mubr.f32.vlgmr.msra.gmra.mrb[0].mxu1 %v1593_v42 }
  0x6d   :  { %1176 = vmatpush1.bf16.msra.mxu1 %v1491_v32  ;;  %v154_v32 = vld [vmem:[#allocation8 + $0x2a0] sm:$0xff]  ;;  %735 = vmatprep.mubr.f32.mxu1 %v1400_v15 }
  0x6e   :  { %1178 = vmatprep.subr.bf16.mxu1 %v1497_v36  ;;  %v162_v36 = vld [vmem:[#allocation8 + $0x2e0] sm:$0xff] }
  0x71   :  { %1180 = vmatpush1.bf16.msra.mxu1 %v1502_v45  ;;  %v1616_v45 = vpack.c.bf16 %v162_v36, %v154_v32  ;;  %v116_v32 = vld [vmem:[#allocation8 + $0x170] sm:$0xff]  ;;  %v125_v36 = vld [vmem:[#allocation8 + $0x1b8] sm:$0xff] }
  0x72   :  { %1182 = vmatprep.subr.bf16.mxu1 %v1504_v46  ;;  %v1618_v46 = vpack.c.bf16 %v179_v1, %v171_v0  ;;  %v133_v0 = vld [vmem:[#allocation8 + $0x1f8] sm:$0xff]  ;;  %v1659_v1 = vpack.c.bf16 %v116_v32, %v108_v61 }
  0x73   :  { %1116 = vmatpush1.bf16.xpose.msra.mxu0 %v1578_v12  ;;  %v181_v61 = vld [vmem:[#allocation8 + $0x378] sm:$0xff] }
  0x74   :  { %1118 = vmatprep.subr.bf16.mxu0 %v1580_v16 }
  0x75   :  { %1184 = vmatpush1.bf16.msra.mxu1 %v1514_v57  ;;  %v170_v57 = vld [vmem:[#allocation8 + $0x320] sm:$0xff] }
  0x76   :  { %1186 = vmatprep.subr.bf16.mxu1 %v1516_v58  ;;  %v178_v58 = vld [vmem:[#allocation8 + $0x360] sm:$0xff] }
  0x79   :  { %1188 = vmatpush1.bf16.msra.mxu1 %v1526_v6  ;;  %v1626_v6 = vpack.c.bf16 %v178_v58, %v170_v57  ;;  %v1661_v57 = vpack.c.bf16 %v133_v0, %v125_v36  ;;  %v124_v58 = vld [vmem:[#allocation8 + $0x1b0] sm:$0xff]  ;;  %v1679_v36 = vpack.c.bf16 %v181_v61, %v173_v29 }
  0x7a   :  { %1190 = vmatprep.subr.bf16.mxu1 %v1528_v9  ;;  %v1628_v9 = vpack.c.bf16 %v195_v17, %v187_v2  ;;  %v132_v2 = vld [vmem:[#allocation8 + $0x1f0] sm:$0xff]  ;;  %v141_v17 = vld [vmem:[#allocation8 + $0x238] sm:$0xff] }
  0x7b   :  { %1120 = vmatpush1.bf16.xpose.msra.mxu0 %v1586_v34  ;;  %v172_v0 = vld [vmem:[#allocation8 + $0x330] sm:$0xff] }
  0x7c   :  { %1122 = vmatprep.subr.bf16.mxu0 %v1588_v35 }
  0x7d   :  { %1192 = vmatpush1.bf16.msra.mxu1 %v1538_v25  ;;  %v186_v25 = vld [vmem:[#allocation8 + $0x3a0] sm:$0xff] }
  0x7e   :  { %1194 = vmatprep.subr.bf16.mxu1 %v1540_v26  ;;  %v194_v26 = vld [vmem:[#allocation8 + $0x3e0] sm:$0xff] }
  0x81   :  { %1196 = vmatpush1.bf16.msra.mxu1 %v1553_v43  ;;  %v1635_v43 = vpack.c.bf16 %v194_v26, %v186_v25  ;;  %v149_v25 = vld [vmem:[#allocation8 + $0x278] sm:$0xff]  ;;  %v1665_v26 = vpack.c.bf16 %v132_v2, %v124_v58  ;;  %v180_v58 = vld [vmem:[#allocation8 + $0x370] sm:$0xff] }
  0x82   :  { %1198 = vmatprep.subr.bf16.mxu1 %v1555_v44  ;;  %v1637_v44 = vpack.c.bf16 %v85_v19, %v77_v18  ;;  %v1667_v18 = vpack.c.bf16 %v149_v25, %v141_v17  ;;  %v140_v19 = vld [vmem:[#allocation8 + $0x230] sm:$0xff]  ;;  %v189_v2 = vld [vmem:[#allocation8 + $0x3b8] sm:$0xff]  ;;  %v1683_v25 = vpack.c.bf16 %v180_v58, %v172_v0  ;;  %v494_v0 = vlaneseq }
  0x83   :  { %1124 = vmatpush1.bf16.xpose.msra.mxu0 %v1595_v53  ;;  %v197_v17 = vld [vmem:[#allocation8 + $0x3f8] sm:$0xff] }
  0x84   :  { %1126 = vmatprep.subr.bf16.mxu0 %v1597_v54 }
  0x85   :  { %1200 = vmatpush1.bf16.msra.mxu1 %v1574_v4  ;;  %v76_v4 = vld [vmem:[#allocation8 + $0x30] sm:$0xff] }
  0x86   :  { %1202 = vmatprep.subr.bf16.mxu1 %v1576_v5  ;;  %v84_v5 = vld [vmem:[#allocation8 + $0x70] sm:$0xff] }
  0x87   :  { %v1643_v37 = vpack.c.bf16 %v84_v5, %v76_v4  ;;  %v148_v4 = vld [vmem:[#allocation8 + $0x270] sm:$0xff]  ;;  %v157_v5 = vld [vmem:[#allocation8 + $0x2b8] sm:$0xff] }
  0x88   :  { %v1671_v23 = vpack.c.bf16 %v148_v4, %v140_v19  ;;  %v1685_v19 = vpack.c.bf16 %v197_v17, %v189_v2  ;;  %v188_v4 = vld [vmem:[#allocation8 + $0x3b0] sm:$0xff]  ;;  %v495_v17 = vand.u32 127, %v494_v0 }
  0x89   :  { %1204 = vmatpush1.bf16.msra.mxu1 %v1075_v30  ;;  %v1647_v30 = vld [vmem:[#allocation5 + $0x38] sm:$0xff]  ;;  %v1044_v2 = vld [vmem:[%s1778_s2] ss:$0 sm:$0xff] }
  0x8a   :  { %1206 = vmatprep.subr.bf16.mxu1 %v1463_v3  ;;  %1794 = vst [vmem:[#allocation19_spill] sm:$0xff] %v1647_v30  ;;  %v92_v3 = vld [vmem:[#allocation8 + $0xb0] sm:$0xff]  ;;  %vm498_vm1 = vcmp.lt.s32.totalorder %v495_v17, 8 }
  0x8b   :  { %1128 = vmatpush1.bf16.xpose.msra.mxu0 %v1606_v62  ;;  %v1653_v55 = vpack.c.bf16 %v100_v40, %v92_v3  ;;  %v1673_v3 = vpack.c.bf16 %v165_v22, %v157_v5  ;;  %v156_v40 = vld [vmem:[#allocation8 + $0x2b0] sm:$0xff] }
  0x8c   :  { %1130 = vmatprep.subr.bf16.mxu0 %v1608_v63  ;;  %v1677_v32 = vpack.c.bf16 %v164_v41, %v156_v40  ;;  %v196_v5 = vld [vmem:[#allocation8 + $0x3f0] sm:$0xff]  ;;  %v1399_v41 = vmov -inf  }
  0x8d   :  { %v1689_v22 = vpack.c.bf16 %v196_v5, %v188_v4  ;;  %v1692_v40 = vld [vmem:[#allocation5 + $0x30] sm:$0xff]  ;;  %52 = vst.msk [vmem:[#allocation2] sm:$0xff] %vm51_vm0, %v1399_v41 }
  0x8e   :  { %1795 = vst [vmem:[#allocation20_spill] sm:$0xff] %v1692_v40 }
  0x93   :  { %1132 = vmatpush1.bf16.xpose.msra.mxu0 %v1616_v45 }
  0x94   :  { %1134 = vmatprep.subr.bf16.mxu0 %v1618_v46  ;;  %v500_v41 = vld [vmem:[#allocation2] sm:$0xff] }
  0x9b   :  { %1136 = vmatpush1.bf16.xpose.msra.mxu0 %v1626_v6 }
  0x9c   :  { %1138 = vmatprep.subr.bf16.mxu0 %v1628_v9 }
  0xa3   :  { %1140 = vmatpush1.bf16.xpose.msra.mxu0 %v1635_v43 }
  0xa4   :  { %1142 = vmatprep.subr.bf16.mxu0 %v1637_v44 }
  0xaa   :  { %403 = vmatmul.mubr.f32.vlgmr.msra.gmra.mrb[0].mxu0 %v1641_v24 }
  0xab   :  { %1144 = vmatpush1.bf16.xpose.msra.mxu0 %v1643_v37  ;;  %472 = vmatprep.mubr.f32.mxu0 %v1647_v30 }
  0xac   :  { %1146 = vmatprep.subr.bf16.mxu0 %v1645_v39 }
  0xb3   :  { %1148 = vmatpush1.bf16.xpose.msra.mxu0 %v1653_v55 }
  0xb4   :  { %1150 = vmatprep.subr.bf16.mxu0 %v1655_v56 }
  0xba   :  { %v490_v30 = vpop.permute.xlu0 %489 }
  0xbb   :  { %1152 = vmatpush1.bf16.xpose.msra.mxu0 %v1659_v1 }
  0xbc   :  { %1154 = vmatprep.subr.bf16.mxu0 %v1661_v57 }
  0xc3   :  { %1156 = vmatpush1.bf16.xpose.msra.mxu0 %v1665_v26 }
  0xc4   :  { %1158 = vmatprep.subr.bf16.mxu0 %v1667_v18 }
  0xcb   :  { %1160 = vmatpush1.bf16.xpose.msra.mxu0 %v1671_v23 }
  0xcc   :  { %1162 = vmatprep.subr.bf16.mxu0 %v1673_v3 }
  0xd3   :  { %1164 = vmatpush1.bf16.xpose.msra.mxu0 %v1677_v32 }
  0xd4   :  { %1166 = vmatprep.subr.bf16.mxu0 %v1679_v36 }
  0xdb   :  { %1168 = vmatpush1.bf16.xpose.msra.mxu0 %v1683_v25 }
  0xdc   :  { %1170 = vmatprep.subr.bf16.mxu0 %v1685_v19 }
  0xe3   :  { %1172 = vmatpush1.bf16.xpose.msra.mxu0 %v1689_v22 }
  0xea   :  { %473 = vmatmul.mubr.f32.vlgmr.msra.gmra.mrb[0].mxu0 %v1692_v40 }
 0x13f   :  { %v264_v29 = vpop.f32.mrb[0].mxu1 }
 0x140   :  { %v266_v61 = vpop.f32.mrb[1].mxu1 }
 0x1bd   :  { %v474_v58 = vpop.f32.mrb[0].mxu0 }
 0x1be   :  { %v1301_v4 = vadd.f32 %v474_v58, %v264_v29  ;;  %v476_v5 = vpop.f32.mrb[1].mxu0 }
 0x1c0   :  { %v485_v52 = vsub.f32 %v1301_v4, %v1044_v2  ;;  %v1802_v4 = vld [vmem:[#allocation19_spill] sm:$0xff] }
 0x1c2   :  { %v492_v24 = vmul.f32 %v490_v30, %v485_v52  ;;  %v1006_v52 = vld [vmem:[%s1780_s4] sm:$0xff]  ;;  %s1401_s4 = smov [#allocation10]  }
 0x1c3   :  { %s1034_s21 = sshll.u32 %s1401_s4, 4  ;;  %s1035_s21 = int_to_ptr.vmem [resolvable:$true] %s1034_s21 }
 0x1c4   :  { %v499_v40 = vsel %vm498_vm1, %v492_v24, -1e+30  ;;  %s1366_s22 = scalar_lea.vmem %s1035_s21, 1024  ;;  %p1371_p3 = scmp.lt.s32.totalorder %s1035_s21, %s1035_s21 }
 0x1c5   :  { %501 = vmax.xlane.f32.xlu0 %v499_v40  ;;  %p1367_p2 = scmp.ne.s32.totalorder %s1035_s21, %s1366_s22  ;;  %p1372_p4 = scmp.lt.s32.totalorder %s1366_s22, %s1366_s22 }
 0x1c7   :  { %p1373_p5 = por %p1372_p4, %p1371_p3 }
 0x1c9   :  { %p1374_p6 = pnand %p1373_p5, %p1367_p2 }
 0x252   :  { %v502_v61 = vpop.xlane.xlu0 %501 }
 0x253   :  { %v503_v49 = vmax.f32 %v500_v41, %v502_v61 }
 0x255   :  { %v504_v38 = vsub.f32 %v500_v41, %v503_v49  ;;  %971 = vst.msk [vmem:[#allocation2] sm:$0xff] %vm51_vm0, %v503_v49  ;;  %509 = vperm.xlu1 %1315, %v503_v49  }
 0x257   :  { %v505_v0 = vmul.f32 1.442695, %v504_v38 }
 0x259   :  { %1316 = vpow2.f32 %v505_v0 }
 0x263   :  { %v1701_v29 = vpop.eup %1316 }
 0x264   :  { %532 = vperm.xlu0 %1314, %v1701_v29  }
 0x268   :  { %1009 = vperm.xlu0 %1314, %v1006_v52  }
 0x2d4   :  { %v510_v24 = vpop.permute.xlu1 %509 }
 0x2d5   :  { %v512_v30 = vsub.f32 %v499_v40, %v510_v24  ;;  %v1801_v40 = vld [vmem:[#allocation20_spill] sm:$0xff] }
 0x2d7   :  { %v513_v58 = vmul.f32 1.442695, %v512_v30 }
 0x2d9   :  { %1318 = vpow2.f32 %v513_v58 }
 0x2e3   :  { %v1319_v2 = vpop.eup %1318 }
 0x2e4   :  { %517 = vadd.xlane.f32.xlu1 %v1319_v2  ;;  %736 = vmatmul.mubr.f32.vlgmr.msra.gmra.mrb[2].mxu1 %v1319_v2 }
 0x2e5   :  { %1208 = vmatpush1.bf16.msra.mxu1 %v1465_v7  ;;  %806 = vmatprep.mubr.f32.mxu1 %v1400_v15  ;;  %v515_v7 = vld [vmem:[#allocation3] sm:$0xff] }
 0x2e6   :  { %1210 = vmatprep.subr.bf16.mxu1 %v1467_v8  ;;  %v516_v8 = vmul.f32 %v1701_v29, %v515_v7 }
 0x2e9   :  { %1212 = vmatpush1.bf16.msra.mxu1 %v1472_v13 }
 0x2ea   :  { %1214 = vmatprep.subr.bf16.mxu1 %v1474_v14 }
 0x2ed   :  { %1216 = vmatpush1.bf16.msra.mxu1 %v1481_v20 }
 0x2ee   :  { %1218 = vmatprep.subr.bf16.mxu1 %v1483_v21 }
 0x2f1   :  { %1220 = vmatpush1.bf16.msra.mxu1 %v1489_v31 }
 0x2f2   :  { %1222 = vmatprep.subr.bf16.mxu1 %v1493_v33 }
 0x2f5   :  { %1224 = vmatpush1.bf16.msra.mxu1 %v1506_v47 }
 0x2f6   :  { %1226 = vmatprep.subr.bf16.mxu1 %v1508_v48 }
 0x2f9   :  { %1228 = vmatpush1.bf16.msra.mxu1 %v1518_v59 }
 0x2fa   :  { %1230 = vmatprep.subr.bf16.mxu1 %v1520_v60  ;;  %v533_v60 = vpop.permute.xlu0 %532 }
 0x2fd   :  { %1232 = vmatpush1.bf16.msra.mxu1 %v1530_v10  ;;  %v535_v10 = vmul.f32 0.0, %v533_v60 }
 0x2fe   :  { %1234 = vmatprep.subr.bf16.mxu1 %v1532_v11 }
 0x301   :  { %1236 = vmatpush1.bf16.msra.mxu1 %v1542_v27 }
 0x302   :  { %1238 = vmatprep.subr.bf16.mxu1 %v1544_v28 }
 0x304   :  { %807 = vmatmul.mubr.f32.vlgmr.msra.gmra.mrb[4].mxu1 %v1319_v2 }
 0x305   :  { %1240 = vmatpush1.bf16.msra.mxu1 %v1559_v50  ;;  %877 = vmatprep.mubr.f32.mxu1 %v1400_v15 }
 0x306   :  { %1242 = vmatprep.subr.bf16.mxu1 %v1561_v51 }
 0x309   :  { %1244 = vmatpush1.bf16.msra.mxu1 %v1578_v12 }
 0x30a   :  { %1246 = vmatprep.subr.bf16.mxu1 %v1580_v16 }
 0x30d   :  { %1248 = vmatpush1.bf16.msra.mxu1 %v1586_v34 }
 0x30e   :  { %1250 = vmatprep.subr.bf16.mxu1 %v1588_v35 }
 0x311   :  { %1252 = vmatpush1.bf16.msra.mxu1 %v1595_v53 }
 0x312   :  { %1254 = vmatprep.subr.bf16.mxu1 %v1597_v54 }
 0x315   :  { %1256 = vmatpush1.bf16.msra.mxu1 %v1606_v62 }
 0x316   :  { %1258 = vmatprep.subr.bf16.mxu1 %v1608_v63  ;;  %v1796_v63 = vld [vmem:[#allocation15_spill] sm:$0xff] }
 0x319   :  { %1260 = vmatpush1.bf16.msra.mxu1 %v1616_v45 }
 0x31a   :  { %1262 = vmatprep.subr.bf16.mxu1 %v1618_v46  ;;  %v1797_v46 = vld [vmem:[#allocation16_spill] sm:$0xff] }
 0x31d   :  { %1264 = vmatpush1.bf16.msra.mxu1 %v1626_v6 }
 0x31e   :  { %1266 = vmatprep.subr.bf16.mxu1 %v1628_v9  ;;  %v1798_v9 = vld [vmem:[#allocation14_spill] sm:$0xff] }
 0x321   :  { %1268 = vmatpush1.bf16.msra.mxu1 %v1635_v43 }
 0x322   :  { %1270 = vmatprep.subr.bf16.mxu1 %v1637_v44  ;;  %v1010_v44 = vpop.permute.xlu0 %1009 }
 0x324   :  { %878 = vmatmul.mubr.f32.vlgmr.msra.gmra.mrb[6].mxu1 %v1319_v2 }
 0x325   :  { %1272 = vmatpush1.bf16.msra.mxu1 %v1643_v37  ;;  %948 = vmatprep.mubr.f32.mxu1 %v1400_v15  ;;  %v1799_v37 = vld [vmem:[#allocation18_spill] sm:$0xff] }
 0x326   :  { %1274 = vmatprep.subr.bf16.mxu1 %v1645_v39 }
 0x329   :  { %1276 = vmatpush1.bf16.msra.mxu1 %v1653_v55  ;;  %v1800_v55 = vld [vmem:[#allocation17_spill] sm:$0xff] }
 0x32a   :  { %1278 = vmatprep.subr.bf16.mxu1 %v1655_v56 }
 0x32d   :  { %1280 = vmatpush1.bf16.msra.mxu1 %v1659_v1 }
 0x32e   :  { %1282 = vmatprep.subr.bf16.mxu1 %v1661_v57 }
 0x331   :  { %1284 = vmatpush1.bf16.msra.mxu1 %v1665_v26 }
 0x332   :  { %1286 = vmatprep.subr.bf16.mxu1 %v1667_v18 }
 0x335   :  { %1288 = vmatpush1.bf16.msra.mxu1 %v1671_v23 }
 0x336   :  { %1290 = vmatprep.subr.bf16.mxu1 %v1673_v3 }
 0x339   :  { %1292 = vmatpush1.bf16.msra.mxu1 %v1677_v32 }
 0x33a   :  { %1294 = vmatprep.subr.bf16.mxu1 %v1679_v36 }
 0x33d   :  { %1296 = vmatpush1.bf16.msra.mxu1 %v1683_v25 }
 0x33e   :  { %1298 = vmatprep.subr.bf16.mxu1 %v1685_v19 }
 0x341   :  { %1300 = vmatpush1.bf16.msra.mxu1 %v1689_v22 }
 0x344   :  { %949 = vmatmul.mubr.f32.vlgmr.msra.gmra.mrb[8].mxu1 %v1319_v2 }
 0x371   :  { %v518_v13 = vpop.xlane.xlu1 %517 }
 0x372   :  { %v519_v14 = vadd.f32 %v518_v13, %v516_v8 }
 0x374   :  { %521 = vst.msk [vmem:[#allocation3] sm:$0xff] %vm51_vm0, %v519_v14 }
 0x37b   :  { %v983_v15 = vld [vmem:[#allocation3] sm:$0xff] }
 0x37c   :  { %1320 = vrcp.f32 %v983_v15 }
 0x386   :  { %v1321_v20 = vpop.eup %1320 }
 0x387   :  { %987 = vperm.xlu1 %1315, %v1321_v20  }
 0x3b7   :  { %v737_v21 = vpop.f32.mrb[2].mxu1 }
 0x3b8   :  { %v739_v31 = vpop.f32.mrb[3].mxu1  ;;  %v955_v11 = vadd.f32 %v737_v21, %v535_v10 }
 0x3b9   :  { %v956_v27 = vadd.f32 %v739_v31, %v535_v10 }
 0x3d7   :  { %v808_v33 = vpop.f32.mrb[4].mxu1 }
 0x3d8   :  { %v810_v47 = vpop.f32.mrb[5].mxu1  ;;  %v957_v28 = vadd.f32 %v808_v33, %v535_v10 }
 0x3d9   :  { %v958_v38 = vadd.f32 %v810_v47, %v535_v10 }
 0x3f7   :  { %v879_v48 = vpop.f32.mrb[6].mxu1 }
 0x3f8   :  { %v881_v59 = vpop.f32.mrb[7].mxu1  ;;  %v959_v49 = vadd.f32 %v879_v48, %v535_v10 }
 0x3f9   :  { %v960_v50 = vadd.f32 %v881_v59, %v535_v10 }
 0x406   :  { %v988_v51 = vpop.permute.xlu1 %987 }
 0x407   :  { %v990_v12 = vmul.f32 %v988_v51, %v955_v11  ;;  %v991_v16 = vmul.f32 %v988_v51, %v956_v27  ;;  %v992_v34 = vmul.f32 %v988_v51, %v957_v28  ;;  %v993_v35 = vmul.f32 %v988_v51, %v958_v38 }
 0x408   :  { %v994_v53 = vmul.f32 %v988_v51, %v959_v49  ;;  %v995_v54 = vmul.f32 %v988_v51, %v960_v50 }
 0x409   :  { %v998_v62 = vsub.f32 %v1593_v42, %v990_v12  ;;  %v999_v45 = vsub.f32 %v1796_v63, %v991_v16  ;;  %v1000_v6 = vsub.f32 %v1797_v46, %v992_v34  ;;  %v1001_v43 = vsub.f32 %v1798_v9, %v993_v35 }
 0x40a   :  { %v1002_v39 = vsub.f32 %v1799_v37, %v994_v53  ;;  %v1003_v56 = vsub.f32 %v1800_v55, %v995_v54 }
 0x40b   :  { %v1012_v1 = vmul.f32 %v1010_v44, %v998_v62  ;;  %v1013_v57 = vmul.f32 %v1010_v44, %v999_v45  ;;  %v1014_v26 = vmul.f32 %v1010_v44, %v1000_v6  ;;  %v1015_v18 = vmul.f32 %v1010_v44, %v1001_v43 }
 0x40c   :  { %v1016_v23 = vmul.f32 %v1010_v44, %v1002_v39  ;;  %v1017_v3 = vmul.f32 %v1010_v44, %v1003_v56 }
 0x40d   :  { %1020 = vst [vmem:[#allocation10] sm:$0xff] %v1012_v1  ;;  %1021 = vst [vmem:[#allocation10 + $0x8] sm:$0xff] %v1013_v57 }
 0x40e   :  { %1022 = vst [vmem:[#allocation10 + $0x10] sm:$0xff] %v1014_v26  ;;  %1023 = vst [vmem:[#allocation10 + $0x18] sm:$0xff] %v1015_v18 }
 0x40f   :  { %1024 = vst [vmem:[#allocation10 + $0x20] sm:$0xff] %v1016_v23  ;;  %1025 = vst [vmem:[#allocation10 + $0x28] sm:$0xff] %v1017_v3 }
 0x417   :  { %v950_v42 = vpop.f32.mrb[8].mxu1 }
 0x418   :  { %v961_v32 = vadd.f32 %v950_v42, %v535_v10  ;;  %v952_v36 = vpop.f32.mrb[9].mxu1 }
 0x419   :  { %v962_v25 = vadd.f32 %v952_v36, %v535_v10 }
 0x41a   :  { %v996_v19 = vmul.f32 %v988_v51, %v961_v32 }
 0x41b   :  { %v997_v22 = vmul.f32 %v988_v51, %v962_v25 }
 0x41c   :  { %v1004_v17 = vsub.f32 %v1801_v40, %v996_v19 }
 0x41d   :  { %v1005_v5 = vsub.f32 %v1802_v4, %v997_v22 }
 0x41e   :  { %v1018_v41 = vmul.f32 %v1010_v44, %v1004_v17 }
 0x41f   :  { %v1019_v61 = vmul.f32 %v1010_v44, %v1005_v5 }
 0x420   :  { %1026 = vst [vmem:[#allocation10 + $0x30] sm:$0xff] %v1018_v41 }
 0x421   :  { %1027 = vst [vmem:[#allocation10 + $0x38] sm:$0xff] %v1019_v61 }
 0x422   :  { %1377 = shalt.err (!%p1374_p6)
}
 0x423   :  { %s1378_s25 = scalar_lea.hbm %s1781_s5, 1024 }
 0x424   :  { %p1379_p7 = scmp.ne.s32.totalorder %s1781_s5, %s1378_s25  ;;  %p1382_p8 = scmp.lt.u32.totalorder %s1378_s25, %s1781_s5 }
 0x426   :  { %p1384_p9 = pnand %p1382_p8, %p1379_p7 }
 0x428   :  { %1387 = shalt.err (!%p1384_p9)
}
 0x429   :  { %1037 = dma.vmem_to_hbm [thread:$0]  %s1035_s21, 1024, %s1781_s5, [#allocation7]  }
 0x42a   :  { %1392 = dma.done.wait [#allocation7], 1024  }
 0x42b   :  { %1393 = vsyncadd [#allocation7], 4294966272 }
 0x42c   :  { %1041 = vsyncpa [#allocation6], 1 }
 0x42d   :  { %1042 = vsyncpa [#allocation9], 1 }
 0x42e   :  { %1043 = vsyncpa [#allocation7], 1 }

</bundles_post_ra>
